<compile_context>
chip_gen: v7x
topology: tpu7x:2x2x1
jax: 0.10.0
libtpu: 0.0.40
codegen_flags: <defaults>
</compile_context>

<pallas_src>
import functools

import jax
import jax.numpy as jnp
from jax import lax
from jax.experimental import pallas as pl
from jax.experimental.pallas import tpu as pltpu


def _attn_kernel(x_ref, w_ref, o_ref, *, use_sigmoid):
    Bb, T, C = x_ref.shape
    Hs = w_ref.shape[1] // 3

    # One fused projection: (Bb*T, C) @ (C, 3*Hs), bf16 in / f32 accumulate.
    x2d = x_ref[...].reshape(Bb * T, C)                         # bf16
    qkv = jnp.dot(x2d, w_ref[...],
                  preferred_element_type=jnp.float32)           # (Bb*T, 3*Hs) f32
    qkv = qkv.reshape(Bb, T, 3 * Hs)

    # 128-aligned lane slices -> free.  Scale is already folded into W_q.
    q = qkv[:, :, 0 * Hs:1 * Hs].astype(jnp.bfloat16)
    k = qkv[:, :, 1 * Hs:2 * Hs].astype(jnp.bfloat16)
    v = qkv[:, :, 2 * Hs:3 * Hs].astype(jnp.bfloat16)

    # Scores: contract over the head dim directly (no k transpose), batched
    # over the per-step batch tile.  f32 accumulation.
    wei = lax.dot_general(
        q, k,
        dimension_numbers=(((2,), (2,)), ((0,), (0,))),
        preferred_element_type=jnp.float32)                     # (Bb, T, T)

    row = lax.broadcasted_iota(jnp.int32, (Bb, T, T), 1)
    col = lax.broadcasted_iota(jnp.int32, (Bb, T, T), 2)
    causal = col <= row

    if use_sigmoid:
        # torch: masked_fill(-inf) then sigmoid -> sigmoid(-inf) == 0.
        # Equivalent, but mask once and never evaluate sigmoid at -inf.
        p = jnp.where(causal, jax.nn.sigmoid(wei), 0.0)
    else:
        wei = jnp.where(causal, wei, -jnp.inf)
        m = jnp.max(wei, axis=-1, keepdims=True)
        e = jnp.exp(wei - m)
        s = jnp.sum(e, axis=-1, keepdims=True)
        p = e * pl.reciprocal(s, approx=True)                   # EUP, not VALU

    # Dropout(p=0) is the identity -> nothing to do.
    # TODO(synk): nn.Dropout with p > 0 would need pltpu.prng_seed /
    # pltpu.prng_random_bits for an in-kernel mask.
    out = lax.dot_general(
        p.astype(jnp.bfloat16), v,
        dimension_numbers=(((2,), (1,)), ((0,), (0,))),
        preferred_element_type=jnp.float32)                     # (Bb, T, Hs)
    o_ref[...] = out.astype(o_ref.dtype)


def prepare_qkv_weight(wq, wk, wv, n_embd):
    """Fold the 1/sqrt(C) scale into W_q, fuse Q/K/V into one (C, 3*Hs) bf16
    matrix.  Do this ONCE at weight-prep time, not per call."""
    scale = float(n_embd) ** (-0.5)      # torch module scales by C**-0.5
    return jnp.concatenate([wq * scale, wk, wv], axis=1).astype(jnp.bfloat16)


def _pick_batch_block(B, T):
    """Largest divisor of B with ~>=512 rows of M per grid step (or all of B)."""
    target = max(1, -(-512 // T))
    bb = min(B, target)
    while B % bb:
        bb -= 1
    return bb


def single_head_attention(x, wqkv, *, use_sigmoid=False, batch_block=None):
    """x: (B, T, C); wqkv: (C, 3*head_size) from prepare_qkv_weight."""
    B, T, C = x.shape
    Hs = wqkv.shape[1] // 3
    Bb = batch_block if batch_block is not None else _pick_batch_block(B, T)
    assert B % Bb == 0

    kernel = functools.partial(_attn_kernel, use_sigmoid=use_sigmoid)
    x_bf = x.astype(jnp.bfloat16)        # halve HBM bytes streamed for x

    return pl.pallas_call(
        kernel,
        out_shape=jax.ShapeDtypeStruct((B, T, Hs), x.dtype),
        grid_spec=pltpu.PrefetchScalarGridSpec(
            num_scalar_prefetch=0,
            grid=(B // Bb,),
            in_specs=[
                # Activation tile: Bb batch elements per step (double-buffered).
                pl.BlockSpec((Bb, T, C), lambda b: (b, 0, 0)),
                # Fused weight stays at block (0, 0) -> DMA'd once, resident.
                pl.BlockSpec((C, 3 * Hs), lambda b: (0, 0)),
            ],
            out_specs=pl.BlockSpec((Bb, T, Hs), lambda b: (b, 0, 0)),
        ),
        compiler_params=pltpu.CompilerParams(
            # Independent batch tiles; on v7x verify this actually shards
            # across the 2 TensorCores (else switch to pltpu.CORE_PARALLEL).
            dimension_semantics=("parallel",),
        ),
    )(x_bf, wqkv)


if __name__ == "__main__":
    n_embd = 128
    head_size = 128          # single head with head_size = n_embd
    block_size = 64
    B, T = 2, block_size     # T = block_size (tril covers the full window)

    key = jax.random.PRNGKey(0)
    kx, kq, kk, kv = jax.random.split(key, 4)

    x = jax.random.normal(kx, (B, T, n_embd), dtype=jnp.float32)

    # nn.Linear(n_embd, head_size, bias=False)-style init, stored transposed
    # (C, head_size) vs. torch's (head_size, C).
    bound = 1.0 / (n_embd ** 0.5)
    wq = jax.random.uniform(kq, (n_embd, head_size), jnp.float32, -bound, bound)
    wk = jax.random.uniform(kk, (n_embd, head_size), jnp.float32, -bound, bound)
    wv = jax.random.uniform(kv, (n_embd, head_size), jnp.float32, -bound, bound)

    wqkv = prepare_qkv_weight(wq, wk, wv, n_embd)   # one-time weight prep

    # Reference in plain JAX (f32, highest matmul precision), same math as torch.
    hp = lax.Precision.HIGHEST
    def ref_attn(use_sigmoid):
        q = jnp.einsum("btc,ch->bth", x, wq, precision=hp)
        k = jnp.einsum("btc,ch->bth", x, wk, precision=hp)
        v = jnp.einsum("btc,ch->bth", x, wv, precision=hp)
        wei = jnp.einsum("bqh,bkh->bqk", q, k, precision=hp) * (n_embd ** -0.5)
        tril = jnp.tril(jnp.ones((T, T), dtype=bool))
        wei = jnp.where(tril[None, :, :], wei, -jnp.inf)
        p = jax.nn.sigmoid(wei) if use_sigmoid else jax.nn.softmax(wei, axis=-1)
        return jnp.einsum("bqk,bkh->bqh", p, v, precision=hp)

    for use_sigmoid in (False, True):
        out = single_head_attention(x, wqkv, use_sigmoid=use_sigmoid)
        jax.block_until_ready(out)
        ref = ref_attn(use_sigmoid)
        assert out.shape == (B, T, head_size)
        # Tolerance re-validated for the bf16 MXU path (f32 accumulation).
        assert jnp.allclose(out, ref, atol=3e-2, rtol=3e-2), (
            use_sigmoid, float(jnp.max(jnp.abs(out - ref))))

    print("KERNEL_OK")
</pallas_src>

<mosaic_0001>
module attributes {stable_mosaic.version = 11 : i64} {
  func.func @_attn_kernel(%arg0: i32, %arg1: memref<2x64x128xbf16, #tpu.memory_space<vmem>>, %arg2: memref<128x384xbf16, #tpu.memory_space<vmem>>, %arg3: memref<2x64x128xf32, #tpu.memory_space<vmem>>) attributes {dimension_semantics = [#tpu.dimension_semantics<parallel>], iteration_bounds = array<i64: 1>, scalar_prefetch = 0 : i64, scratch_operands = 0 : i64, tpu.core_type = #tpu.core_type<tc>, window_params = [{transform_indices = @transform_0, window_bounds = array<i64: 2, 64, 128>}, {pipeline_mode = #tpu.pipeline_mode<synchronous>, transform_indices = @transform_1, window_bounds = array<i64: 128, 384>}, {transform_indices = @transform_2, window_bounds = array<i64: 2, 64, 128>}]} {
    %c0 = arith.constant 0 : index
    %c0_0 = arith.constant 0 : index
    %c0_1 = arith.constant 0 : index
    %0 = vector.load %arg1[%c0, %c0_0, %c0_1] : memref<2x64x128xbf16, #tpu.memory_space<vmem>>, vector<2x64x128xbf16>
    %1 = vector.shape_cast %0 : vector<2x64x128xbf16> to vector<128x128xbf16>
    %c0_2 = arith.constant 0 : index
    %c0_3 = arith.constant 0 : index
    %2 = vector.load %arg2[%c0_2, %c0_3] : memref<128x384xbf16, #tpu.memory_space<vmem>>, vector<128x384xbf16>
    %cst = arith.constant dense<0.000000e+00> : vector<128x384xf32>
    %3 = tpu.matmul %1, %2, %cst {dimension_numbers = #tpu.dot_dimension_numbers<[1], [0], [0], [1], [0, 0, 1, 1], [], []>} : vector<128x128xbf16>, vector<128x384xbf16>, vector<128x384xf32> -> vector<128x384xf32>
    %4 = vector.shape_cast %3 : vector<128x384xf32> to vector<2x64x384xf32>
    %5 = vector.extract_strided_slice %4 {offsets = [0, 0, 0], sizes = [2, 64, 128], strides = [1, 1, 1]} : vector<2x64x384xf32> to vector<2x64x128xf32>
    %6 = arith.truncf %5 : vector<2x64x128xf32> to vector<2x64x128xbf16>
    %7 = vector.extract_strided_slice %4 {offsets = [0, 0, 128], sizes = [2, 64, 128], strides = [1, 1, 1]} : vector<2x64x384xf32> to vector<2x64x128xf32>
    %8 = arith.truncf %7 : vector<2x64x128xf32> to vector<2x64x128xbf16>
    %9 = vector.extract_strided_slice %4 {offsets = [0, 0, 256], sizes = [2, 64, 128], strides = [1, 1, 1]} : vector<2x64x384xf32> to vector<2x64x128xf32>
    %10 = arith.truncf %9 : vector<2x64x128xf32> to vector<2x64x128xbf16>
    %cst_4 = arith.constant dense<0.000000e+00> : vector<2x64x64xf32>
    %11 = tpu.matmul %6, %8, %cst_4 {dimension_numbers = #tpu.dot_dimension_numbers<[2], [2], [1], [1], [0, 0, 0, 1, 1, 1], [0], [0]>} : vector<2x64x128xbf16>, vector<2x64x128xbf16>, vector<2x64x64xf32> -> vector<2x64x64xf32>
    %12 = tpu.iota {dimensions = array<i32: 1>} : vector<2x64x64xi32>
    %13 = tpu.iota {dimensions = array<i32: 2>} : vector<2x64x64xi32>
    %14 = arith.cmpi sle, %13, %12 : vector<2x64x64xi32>
    %cst_5 = arith.constant 0xFF800000 : f32
    %15 = vector.broadcast %cst_5 : f32 to vector<2x64x64xf32>
    %16 = arith.select %14, %11, %15 : vector<2x64x64xi1>, vector<2x64x64xf32>
    %cst_6 = arith.constant dense<0xFF800000> : vector<2x64xf32>
    %17 = vector.multi_reduction <maximumf>, %16, %cst_6 [2] : vector<2x64x64xf32> to vector<2x64xf32>
    %18 = vector.shape_cast %17 : vector<2x64xf32> to vector<2x64x1xf32>
    %19 = vector.broadcast %18 : vector<2x64x1xf32> to vector<2x64x64xf32>
    %20 = arith.subf %16, %19 : vector<2x64x64xf32>
    %21 = math.exp %20 : vector<2x64x64xf32>
    %cst_7 = arith.constant dense<0.000000e+00> : vector<2x64xf32>
    %22 = vector.multi_reduction <add>, %21, %cst_7 [2] : vector<2x64x64xf32> to vector<2x64xf32>
    %23 = vector.shape_cast %22 : vector<2x64xf32> to vector<2x64x1xf32>
    %24 = tpu.reciprocal %23 {approx = true} : vector<2x64x1xf32> -> vector<2x64x1xf32>
    %25 = vector.broadcast %24 : vector<2x64x1xf32> to vector<2x64x64xf32>
    %26 = arith.mulf %21, %25 : vector<2x64x64xf32>
    %27 = arith.truncf %26 : vector<2x64x64xf32> to vector<2x64x64xbf16>
    %cst_8 = arith.constant dense<0.000000e+00> : vector<2x64x128xf32>
    %28 = tpu.matmul %27, %10, %cst_8 {dimension_numbers = #tpu.dot_dimension_numbers<[2], [1], [1], [2], [0, 0, 0, 1, 1, 2], [0], [0]>} : vector<2x64x64xbf16>, vector<2x64x128xbf16>, vector<2x64x128xf32> -> vector<2x64x128xf32>
    %c0_9 = arith.constant 0 : index
    %c0_10 = arith.constant 0 : index
    %c0_11 = arith.constant 0 : index
    %29 = vector.load %arg3[%c0_9, %c0_10, %c0_11] : memref<2x64x128xf32, #tpu.memory_space<vmem>>, vector<2x64x128xf32>
    tpu.vector_store %arg3[%c0_9, %c0_10, %c0_11], %28 {strides = array<i32>} : memref<2x64x128xf32, #tpu.memory_space<vmem>>, vector<2x64x128xf32>,
    return
  }
  func.func @transform_0(%arg0: i32) -> (i32, i32, i32) {
    %c0_i32 = arith.constant 0 : i32
    %c0_i32_0 = arith.constant 0 : i32
    %c0_i32_1 = arith.constant 0 : i32
    return %arg0, %c0_i32, %c0_i32_0 : i32, i32, i32
  }
  func.func @transform_1(%arg0: i32) -> (i32, i32) {
    %c0_i32 = arith.constant 0 : i32
    %c0_i32_0 = arith.constant 0 : i32
    %c0_i32_1 = arith.constant 0 : i32
    return %c0_i32, %c0_i32_0 : i32, i32
  }
  func.func @transform_2(%arg0: i32) -> (i32, i32, i32) {
    %c0_i32 = arith.constant 0 : i32
    %c0_i32_0 = arith.constant 0 : i32
    %c0_i32_1 = arith.constant 0 : i32
    return %arg0, %c0_i32, %c0_i32_0 : i32, i32, i32
  }
}

</mosaic_0001>

<bundles_post_ra>
// kernel: tpu_custom_call.1
= control target key start
LH: loop header
LB: loop body
LE: loop exit
PB: predicated region body
PF: predicated region fallthrough
CT: control target
= control target key end

     0   :  { %7 = vsyncpa [#allocation3], 0  ;;  %s1702_s0 = inlined_call_operand.hbm [shape: bf16[2,64,128], index: 0, kind: input, shape index: {}]   ;;  %s1703_s1 = inlined_call_operand.hbm [shape: bf16[128,384], index: 1, kind: input, shape index: {}]   ;;  %s1704_s2 = inlined_call_operand.hbm [shape: f32[2,64,128], index: 2, kind: output, shape index: {}]  }
   0x1   :  { %8 = vsyncpa [#allocation6], 0 }
   0x2   :  { %9 = vsyncpa [#allocation4], 0  ;;  %s1407_s9 = smov [#allocation2]   ;;  %s1335_s13 = scalar_lea.hbm %s1702_s0, 1024 }
   0x3   :  { %s15_s10 = sshll.u32 %s1407_s9, 4  ;;  %p1336_p0 = scmp.ne.s32.totalorder %s1702_s0, %s1335_s13  ;;  %s16_s10 = int_to_ptr.vmem [resolvable:$true] %s15_s10 }
   0x4   :  { %p1339_p1 = scmp.lt.u32.totalorder %s1335_s13, %s1702_s0 }
   0x6   :  { %p1341_p2 = pnand %p1339_p1, %p1336_p0 }
   0x8   :  { %1344 = shalt.err (!%p1341_p2)
}
   0x9   :  { %s1345_s18 = scalar_lea.vmem %s16_s10, 1024  ;;  %p1350_p4 = scmp.lt.s32.totalorder %s16_s10, %s16_s10 }
   0xa   :  { %p1346_p3 = scmp.ne.s32.totalorder %s16_s10, %s1345_s18  ;;  %p1351_p5 = scmp.lt.s32.totalorder %s1345_s18, %s1345_s18 }
   0xc   :  { %p1352_p6 = por %p1351_p5, %p1350_p4 }
   0xe   :  { %p1353_p7 = pnand %p1352_p6, %p1346_p3 }
  0x10   :  { %1356 = shalt.err (!%p1353_p7)
}
  0x11   :  { %s1408_s19 = smov 64   ;;  %s1409_s20 = smov 4  }
  0x12   :  { %21 = dma.hbm_to_vmem [thread:$0]  %s1702_s0, 1024, %s16_s10, [#allocation3], %s1408_s19, %s1408_s19, %s1409_s20  }
  0x13   :  { %s1410_s23 = smov [#allocation5]   ;;  %s1357_s27 = scalar_lea.hbm %s1703_s1, 3072 }
  0x14   :  { %s27_s24 = sshll.u32 %s1410_s23, 4  ;;  %p1358_p8 = scmp.ne.s32.totalorder %s1703_s1, %s1357_s27  ;;  %s28_s24 = int_to_ptr.vmem [resolvable:$true] %s27_s24 }
  0x15   :  { %p1361_p9 = scmp.lt.u32.totalorder %s1357_s27, %s1703_s1 }
  0x17   :  { %p1363_p10 = pnand %p1361_p9, %p1358_p8 }
  0x19   :  { %1366 = shalt.err (!%p1363_p10)
}
  0x1a   :  { %s1367_s4 = scalar_lea.vmem %s28_s24, 3072  ;;  %p1372_p12 = scmp.lt.s32.totalorder %s28_s24, %s28_s24 }
  0x1b   :  { %p1368_p11 = scmp.ne.s32.totalorder %s28_s24, %s1367_s4  ;;  %p1373_p13 = scmp.lt.s32.totalorder %s1367_s4, %s1367_s4 }
  0x1d   :  { %p1374_p0 = por %p1373_p13, %p1372_p12 }
  0x1f   :  { %p1375_p1 = pnand %p1374_p0, %p1368_p11 }
  0x21   :  { %1378 = shalt.err (!%p1375_p1)
}
  0x22   :  { %s1411_s0 = smov 192   ;;  %s1412_s5 = smov 12  }
  0x23   :  { %33 = dma.hbm_to_vmem [thread:$0]  %s1703_s1, 3072, %s28_s24, [#allocation6], %s1411_s0, %s1411_s0, %s1412_s5  }
  0x24   :  { %1401 = dma.done.wait [#allocation3], 1024  }
  0x25   :  { %1402 = vsyncadd [#allocation3], 4294966272 }
  0x26   :  { %1403 = dma.done.wait [#allocation6], 3072  }
  0x27   :  { %1404 = vsyncadd [#allocation6], 4294964224  ;;  %v1413_v0 = vmov 0   ;;  %v1231_v1 = vld [vmem:[#allocation5 + $0x4] ss:$12 sps:$4 sm:$0xff]   ;;  %v1256_v24 = vld [vmem:[#allocation2 + $0x8] sm:$0xff]  }
  0x28   :  { %297 = vmatprep.mubr.bf16.mxu0 %v1413_v0  ;;  %v1233_v2 = vld [vmem:[#allocation5] ss:$12 sps:$4 sm:$0xff]   ;;  %265 = vmatprep.subr.bf16.mxu0 %v1231_v1  ;;  %v1234_v3 = vld [vmem:[#allocation5 + $0x1c] ss:$12 sps:$4 sm:$0xff]   ;;  %v1236_v4 = vld [vmem:[#allocation5 + $0x18] ss:$12 sps:$4 sm:$0xff]  }
  0x29   :  { %266 = vmatpush1.bf16.msra.mxu0 %v1233_v2  ;;  %v1237_v5 = vld [vmem:[#allocation5 + $0x34] ss:$12 sps:$4 sm:$0xff]   ;;  %v1239_v6 = vld [vmem:[#allocation5 + $0x30] ss:$12 sps:$4 sm:$0xff]   ;;  %v1240_v7 = vld [vmem:[#allocation5 + $0x4c] ss:$12 sps:$4 sm:$0xff]  }
  0x2a   :  { %267 = vmatprep.subr.bf16.mxu0 %v1234_v3  ;;  %v1242_v8 = vld [vmem:[#allocation5 + $0x48] ss:$12 sps:$4 sm:$0xff]   ;;  %v1255_v9 = vld [vmem:[#allocation2] sm:$0xff]   ;;  %v1251_v17 = vld [vmem:[#allocation5 + $0x90] ss:$12 sps:$4 sm:$0xff]   ;;  %vm664_vm2 = vcmask 523264  }
  0x2b   :  { %v1243_v10 = vld [vmem:[#allocation5 + $0x64] ss:$12 sps:$4 sm:$0xff]   ;;  %1141 = vmatprep.mubr.bf16.mxu1 %v1255_v9  ;;  %v1245_v11 = vld [vmem:[#allocation5 + $0x60] ss:$12 sps:$4 sm:$0xff]   ;;  %v1246_v12 = vld [vmem:[#allocation5 + $0x7c] ss:$12 sps:$4 sm:$0xff]  }
  0x2c   :  { %v1248_v13 = vld [vmem:[#allocation5 + $0x78] ss:$12 sps:$4 sm:$0xff]   ;;  %v1249_v14 = vld [vmem:[#allocation5 + $0x94] ss:$12 sps:$4 sm:$0xff]   ;;  %v1266_v21 = vld [vmem:[#allocation5 + $0x50] ss:$12 sps:$4 sm:$0xff]  }
  0x2d   :  { %268 = vmatpush1.bf16.msra.mxu0 %v1236_v4  ;;  %v1263_v15 = vld [vmem:[#allocation5 + $0x8] ss:$12 sps:$4 sm:$0xff]   ;;  %v1264_v16 = vld [vmem:[#allocation5 + $0x20] ss:$12 sps:$4 sm:$0xff]   ;;  %v1265_v18 = vld [vmem:[#allocation5 + $0x38] ss:$12 sps:$4 sm:$0xff]  }
  0x2e   :  { %269 = vmatprep.subr.bf16.mxu0 %v1237_v5  ;;  %1125 = vmatprep.subr.bf16.mxu1 %v1263_v15  ;;  %v1252_v19 = vld [vmem:[#allocation5 + $0xac] ss:$12 sps:$4 sm:$0xff]   ;;  %v1254_v20 = vld [vmem:[#allocation5 + $0xa8] ss:$12 sps:$4 sm:$0xff]   ;;  %v1270_v26 = vld [vmem:[#allocation5 + $0xb0] ss:$12 sps:$4 sm:$0xff]  }
  0x2f   :  { %1126 = vmatpush3.bf16.msra.mxu1 %v1263_v15  ;;  %v1267_v22 = vld [vmem:[#allocation5 + $0x68] ss:$12 sps:$4 sm:$0xff]   ;;  %v1268_v23 = vld [vmem:[#allocation5 + $0x80] ss:$12 sps:$4 sm:$0xff]   ;;  %v1269_v25 = vld [vmem:[#allocation5 + $0x98] ss:$12 sps:$4 sm:$0xff]  }
  0x30   :  { %1127 = vmatprep.subr.bf16.mxu1 %v1264_v16  ;;  %v1257_v27 = vld [vmem:[#allocation2 + $0x10] sm:$0xff]   ;;  %v1258_v28 = vld [vmem:[#allocation2 + $0x18] sm:$0xff]   ;;  %v1259_v29 = vld [vmem:[#allocation2 + $0x20] sm:$0xff]   ;;  %s1414_s1 = smov [#allocation7]  }
  0x31   :  { %270 = vmatpush1.bf16.msra.mxu0 %v1239_v6  ;;  %v1260_v30 = vld [vmem:[#allocation2 + $0x28] sm:$0xff]   ;;  %v1261_v31 = vld [vmem:[#allocation2 + $0x30] sm:$0xff]   ;;  %v1262_v32 = vld [vmem:[#allocation2 + $0x38] sm:$0xff]   ;;  %s1024_s8 = sshll.u32 %s1414_s1, 4  ;;  %s1025_s8 = int_to_ptr.vmem [resolvable:$true] %s1024_s8 }
  0x32   :  { %271 = vmatprep.subr.bf16.mxu0 %v1240_v7  ;;  %s1379_s9 = scalar_lea.vmem %s1025_s8, 2048  ;;  %p1384_p3 = scmp.lt.s32.totalorder %s1025_s8, %s1025_s8 }
  0x33   :  { %1128 = vmatpush3.bf16.msra.mxu1 %v1264_v16  ;;  %p1380_p2 = scmp.ne.s32.totalorder %s1025_s8, %s1379_s9  ;;  %p1385_p4 = scmp.lt.s32.totalorder %s1379_s9, %s1379_s9 }
  0x34   :  { %1129 = vmatprep.subr.bf16.mxu1 %v1265_v18 }
  0x35   :  { %272 = vmatpush1.bf16.msra.mxu0 %v1242_v8  ;;  %p1386_p5 = por %p1385_p4, %p1384_p3 }
  0x36   :  { %273 = vmatprep.subr.bf16.mxu0 %v1243_v10 }
  0x37   :  { %1130 = vmatpush3.bf16.msra.mxu1 %v1265_v18  ;;  %p1387_p6 = pnand %p1386_p5, %p1380_p2 }
  0x38   :  { %1131 = vmatprep.subr.bf16.mxu1 %v1266_v21 }
  0x39   :  { %274 = vmatpush1.bf16.msra.mxu0 %v1245_v11 }
  0x3a   :  { %275 = vmatprep.subr.bf16.mxu0 %v1246_v12 }
  0x3b   :  { %1132 = vmatpush3.bf16.msra.mxu1 %v1266_v21 }
  0x3c   :  { %1133 = vmatprep.subr.bf16.mxu1 %v1267_v22 }
  0x3d   :  { %276 = vmatpush1.bf16.msra.mxu0 %v1248_v13 }
  0x3e   :  { %277 = vmatprep.subr.bf16.mxu0 %v1249_v14 }
  0x3f   :  { %1134 = vmatpush3.bf16.msra.mxu1 %v1267_v22 }
  0x40   :  { %1135 = vmatprep.subr.bf16.mxu1 %v1268_v23 }
  0x41   :  { %278 = vmatpush1.bf16.msra.mxu0 %v1251_v17 }
  0x42   :  { %279 = vmatprep.subr.bf16.mxu0 %v1252_v19 }
  0x43   :  { %1136 = vmatpush3.bf16.msra.mxu1 %v1268_v23 }
  0x44   :  { %1137 = vmatprep.subr.bf16.mxu1 %v1269_v25 }
  0x45   :  { %280 = vmatpush1.bf16.msra.mxu0 %v1254_v20 }
  0x47   :  { %1138 = vmatpush3.bf16.msra.mxu1 %v1269_v25 }
  0x48   :  { %298 = vmatmul.mubr.bf16.vlgmr.msra.gmra.mrb[0].mxu0 %v1255_v9  ;;  %1139 = vmatprep.subr.bf16.mxu1 %v1270_v26 }
  0x49   :  { %307 = vmatprep.mubr.bf16.mxu0 %v1413_v0 }
  0x4b   :  { %1140 = vmatpush3.bf16.msra.mxu1 %v1270_v26 }
  0x4e   :  { %1142 = vmatmul.mubr.bf16.vlgmr.msra.gmra.mrb[0].mxu1 %v1256_v24 }
  0x4f   :  { %1145 = vmatprep.mubr.bf16.mxu1 %v1257_v27 }
  0x50   :  { %308 = vmatmul.mubr.bf16.gmra.mrb[4].mxu0 %v1256_v24 }
  0x51   :  { %317 = vmatprep.mubr.bf16.mxu0 %v1413_v0 }
  0x56   :  { %1146 = vmatmul.mubr.bf16.gmra.mrb[4].mxu1 %v1258_v28 }
  0x57   :  { %1149 = vmatprep.mubr.bf16.mxu1 %v1259_v29 }
  0x58   :  { %318 = vmatmul.mubr.bf16.gmra.mrb[8].mxu0 %v1257_v27 }
  0x59   :  { %327 = vmatprep.mubr.bf16.mxu0 %v1413_v0 }
  0x5e   :  { %1150 = vmatmul.mubr.bf16.gmra.mrb[8].mxu1 %v1260_v30 }
  0x5f   :  { %1153 = vmatprep.mubr.bf16.mxu1 %v1261_v31 }
  0x60   :  { %328 = vmatmul.mubr.bf16.gmra.mrb[12].mxu0 %v1258_v28 }
  0x61   :  { %337 = vmatprep.mubr.bf16.mxu0 %v1413_v0 }
  0x66   :  { %1154 = vmatmul.mubr.bf16.gmra.mrb[12].mxu1 %v1262_v32 }
  0x68   :  { %338 = vmatmul.mubr.bf16.gmra.mrb[16].mxu0 %v1259_v29 }
  0x69   :  { %347 = vmatprep.mubr.bf16.mxu0 %v1413_v0 }
  0x70   :  { %348 = vmatmul.mubr.bf16.gmra.mrb[20].mxu0 %v1260_v30 }
  0x71   :  { %357 = vmatprep.mubr.bf16.mxu0 %v1413_v0 }
  0x78   :  { %358 = vmatmul.mubr.bf16.gmra.mrb[24].mxu0 %v1261_v31 }
  0x79   :  { %367 = vmatprep.mubr.bf16.mxu0 %v1413_v0 }
  0x80   :  { %368 = vmatmul.mubr.bf16.gmra.mrb[28].mxu0 %v1262_v32 }
 0x11b   :  { %v299_v33 = vpop.f32.mrb[0].mxu0 }
 0x11c   :  { %v301_v34 = vpop.f32.mrb[1].mxu0 }
 0x11d   :  { %v303_v35 = vpop.f32.mrb[2].mxu0 }
 0x11e   :  { %v475_v36 = vpack.c.bf16 %v303_v35, %v299_v33  ;;  %v305_v37 = vpop.f32.mrb[3].mxu0 }
 0x11f   :  { %v483_v38 = vpack.c.bf16 %v305_v37, %v301_v34 }
 0x120   :  { %1165 = vmatprep.mubr.bf16.mxu1 %v475_v36 }
 0x121   :  { %1157 = vmatprep.subr.bf16.mxu1 %v483_v38  ;;  %v1143_v50 = vpop.f32.mrb[0].mxu1 }
 0x122   :  { %1158 = vmatpush3.bf16.xpose.msra.mxu1 %v483_v38  ;;  %v412_v52 = vpop.f32.mrb[1].mxu1 }
 0x123   :  { %v309_v39 = vpop.f32.mrb[4].mxu0  ;;  %v1144_v53 = vpop.f32.mrb[2].mxu1 }
 0x124   :  { %v311_v40 = vpop.f32.mrb[5].mxu0  ;;  %v492_v54 = vpack.c.bf16 %v1144_v53, %v1143_v50  ;;  %v415_v55 = vpop.f32.mrb[3].mxu1 }
 0x125   :  { %v313_v41 = vpop.f32.mrb[6].mxu0  ;;  %v491_v56 = vpack.c.bf16 %v415_v55, %v412_v52 }
 0x126   :  { %v476_v42 = vpack.c.bf16 %v313_v41, %v309_v39  ;;  %v315_v43 = vpop.f32.mrb[7].mxu0  ;;  %v629_v41 = vlaneseq }
 0x127   :  { %v484_v44 = vpack.c.bf16 %v315_v43, %v311_v40 }
 0x129   :  { %1159 = vmatprep.subr.bf16.mxu1 %v484_v44  ;;  %v1147_v62 = vpop.f32.mrb[4].mxu1 }
 0x12a   :  { %1160 = vmatpush3.bf16.xpose.msra.mxu1 %v484_v44  ;;  %v428_v0 = vpop.f32.mrb[5].mxu1  ;;  %v1473_v44 = vand.u32 127, %v629_v41 }
 0x12b   :  { %v319_v45 = vpop.f32.mrb[8].mxu0  ;;  %v1148_v1 = vpop.f32.mrb[6].mxu1 }
 0x12c   :  { %v321_v46 = vpop.f32.mrb[9].mxu0  ;;  %v494_v2 = vpack.c.bf16 %v1148_v1, %v1147_v62  ;;  %v431_v3 = vpop.f32.mrb[7].mxu1 }
 0x12d   :  { %v323_v47 = vpop.f32.mrb[10].mxu0  ;;  %v493_v4 = vpack.c.bf16 %v431_v3, %v428_v0 }
 0x12e   :  { %v477_v48 = vpack.c.bf16 %v323_v47, %v319_v45  ;;  %v325_v49 = vpop.f32.mrb[11].mxu0 }
 0x12f   :  { %v485_v51 = vpack.c.bf16 %v325_v49, %v321_v46 }
 0x131   :  { %1161 = vmatprep.subr.bf16.mxu1 %v485_v51  ;;  %v1151_v10 = vpop.f32.mrb[8].mxu1 }
 0x132   :  { %1162 = vmatpush3.bf16.xpose.msra.mxu1 %v485_v51  ;;  %v444_v12 = vpop.f32.mrb[9].mxu1 }
 0x133   :  { %v329_v57 = vpop.f32.mrb[12].mxu0  ;;  %v1152_v13 = vpop.f32.mrb[10].mxu1 }
 0x134   :  { %v331_v58 = vpop.f32.mrb[13].mxu0  ;;  %v1464_v14 = vpack.c.bf16 %v1152_v13, %v1151_v10  ;;  %v447_v15 = vpop.f32.mrb[11].mxu1 }
 0x135   :  { %v333_v59 = vpop.f32.mrb[14].mxu0  ;;  %v1466_v16 = vpack.c.bf16 %v447_v15, %v444_v12 }
 0x136   :  { %v478_v60 = vpack.c.bf16 %v333_v59, %v329_v57  ;;  %v335_v61 = vpop.f32.mrb[15].mxu0 }
 0x137   :  { %v486_v63 = vpack.c.bf16 %v335_v61, %v331_v58 }
 0x139   :  { %1163 = vmatprep.subr.bf16.mxu1 %v486_v63  ;;  %v1155_v22 = vpop.f32.mrb[12].mxu1 }
 0x13a   :  { %1164 = vmatpush3.bf16.xpose.msra.mxu1 %v486_v63  ;;  %v460_v24 = vpop.f32.mrb[13].mxu1 }
 0x13b   :  { %v339_v5 = vpop.f32.mrb[16].mxu0  ;;  %1189 = vmatprep.subr.bf16.mxu1 %v491_v56  ;;  %v1156_v25 = vpop.f32.mrb[14].mxu1 }
 0x13c   :  { %v341_v6 = vpop.f32.mrb[17].mxu0  ;;  %v1468_v26 = vpack.c.bf16 %v1156_v25, %v1155_v22  ;;  %v463_v27 = vpop.f32.mrb[15].mxu1 }
 0x13d   :  { %v343_v7 = vpop.f32.mrb[18].mxu0  ;;  %v1470_v28 = vpack.c.bf16 %v463_v27, %v460_v24 }
 0x13e   :  { %v479_v8 = vpack.c.bf16 %v343_v7, %v339_v5  ;;  %v345_v9 = vpop.f32.mrb[19].mxu0 }
 0x13f   :  { %v487_v11 = vpack.c.bf16 %v345_v9, %v341_v6 }
 0x140   :  { %1181 = vmatprep.mubr.bf16.mxu0 %v479_v8 }
 0x141   :  { %1166 = vmatmul.mubr.bf16.vlgmr.msra.gmra.mrb[16].mxu1 %v476_v42  ;;  %1173 = vmatprep.subr.bf16.mxu0 %v487_v11  ;;  %v630_v42 = vshrl.u32 %v629_v41, 7 }
 0x142   :  { %1169 = vmatprep.mubr.bf16.mxu1 %v477_v48  ;;  %1174 = vmatpush3.bf16.xpose.msra.mxu0 %v487_v11 }
 0x143   :  { %v349_v17 = vpop.f32.mrb[20].mxu0  ;;  %1190 = vmatpush3.bf16.msra.mxu1 %v491_v56  ;;  %v632_v43 = vadd.s32 16, %v630_v42  ;;  %v633_v45 = vadd.s32 24, %v630_v42  ;;  %v631_v46 = vadd.s32 8, %v630_v42  ;;  %vm640_vm1 = vcmp.le.s32.totalorder %v1473_v44, %v630_v42 }
 0x144   :  { %v351_v18 = vpop.f32.mrb[21].mxu0  ;;  %1191 = vmatprep.subr.bf16.mxu1 %v492_v54  ;;  %v634_v56 = vadd.s32 32, %v630_v42  ;;  %v636_v58 = vadd.s32 48, %v630_v42  ;;  %v635_v59 = vadd.s32 40, %v630_v42  ;;  %v637_v62 = vadd.s32 56, %v630_v42 }
 0x145   :  { %v353_v19 = vpop.f32.mrb[22].mxu0  ;;  %vm642_vm0 = vcmp.le.s32.totalorder %v1473_v44, %v632_v43  ;;  %vm643_vm3 = vcmp.le.s32.totalorder %v1473_v44, %v633_v45  ;;  %vm641_vm4 = vcmp.le.s32.totalorder %v1473_v44, %v631_v46 }
 0x146   :  { %v480_v20 = vpack.c.bf16 %v353_v19, %v349_v17  ;;  %v355_v21 = vpop.f32.mrb[23].mxu0  ;;  %vm644_vm5 = vcmp.le.s32.totalorder %v1473_v44, %v634_v56  ;;  %vm646_vm6 = vcmp.le.s32.totalorder %v1473_v44, %v636_v58  ;;  %vm645_vm7 = vcmp.le.s32.totalorder %v1473_v44, %v635_v59 }
 0x147   :  { %v488_v23 = vpack.c.bf16 %v355_v21, %v351_v18  ;;  %1192 = vmatpush3.bf16.msra.mxu1 %v492_v54  ;;  %vm647_vm8 = vcmp.le.s32.totalorder %v1473_v44, %v637_v62 }
 0x148   :  { %1193 = vmatprep.subr.bf16.mxu1 %v493_v4 }
 0x149   :  { %1170 = vmatmul.mubr.bf16.gmra.mrb[20].mxu1 %v478_v60  ;;  %1175 = vmatprep.subr.bf16.mxu0 %v488_v23 }
 0x14a   :  { %1176 = vmatpush3.bf16.xpose.msra.mxu0 %v488_v23 }
 0x14b   :  { %v359_v29 = vpop.f32.mrb[24].mxu0  ;;  %1194 = vmatpush3.bf16.msra.mxu1 %v493_v4 }
 0x14c   :  { %v361_v30 = vpop.f32.mrb[25].mxu0  ;;  %1195 = vmatprep.subr.bf16.mxu1 %v494_v2 }
 0x14d   :  { %v363_v31 = vpop.f32.mrb[26].mxu0 }
 0x14e   :  { %v481_v32 = vpack.c.bf16 %v363_v31, %v359_v29  ;;  %v365_v33 = vpop.f32.mrb[27].mxu0 }
 0x14f   :  { %v489_v34 = vpack.c.bf16 %v365_v33, %v361_v30  ;;  %1196 = vmatpush3.bf16.msra.mxu1 %v494_v2 }
 0x150   :  { %1205 = vmatprep.subr.bf16.mxu1 %v1466_v16 }
 0x151   :  { %1177 = vmatprep.subr.bf16.mxu0 %v489_v34 }
 0x152   :  { %1178 = vmatpush3.bf16.xpose.msra.mxu0 %v489_v34 }
 0x153   :  { %v369_v35 = vpop.f32.mrb[28].mxu0 }
 0x154   :  { %v371_v36 = vpop.f32.mrb[29].mxu0 }
 0x155   :  { %v373_v37 = vpop.f32.mrb[30].mxu0 }
 0x156   :  { %v482_v38 = vpack.c.bf16 %v373_v37, %v369_v35  ;;  %v375_v39 = vpop.f32.mrb[31].mxu0 }
 0x157   :  { %v490_v40 = vpack.c.bf16 %v375_v39, %v371_v36 }
 0x159   :  { %1179 = vmatprep.subr.bf16.mxu0 %v490_v40 }
 0x15a   :  { %1180 = vmatpush3.bf16.xpose.msra.mxu0 %v490_v40 }
 0x161   :  { %1182 = vmatmul.mubr.bf16.vlgmr.msra.gmra.mrb[32].mxu0 %v480_v20 }
 0x162   :  { %1185 = vmatprep.mubr.bf16.mxu0 %v481_v32 }
 0x169   :  { %1186 = vmatmul.mubr.bf16.gmra.mrb[36].mxu0 %v482_v38 }
 0x214   :  { %v1167_v47 = vpop.f32.mrb[16].mxu1 }
 0x215   :  { %v1480_v48 = vsel %vm642_vm0, %v1167_v47, -inf  ;;  %v533_v49 = vpop.f32.mrb[17].mxu1 }
 0x216   :  { %v1485_v50 = vsel %vm640_vm1, %v533_v49, -inf  ;;  %v1168_v51 = vpop.f32.mrb[18].mxu1  ;;  %v671_v52 = vsel %vm664_vm2, %v1480_v48, -inf }
 0x217   :  { %v1491_v53 = vsel %vm643_vm3, %v1168_v51, -inf  ;;  %672 = vmax.xlane.f32.xlu1 %v671_v52  ;;  %v536_v54 = vpop.f32.mrb[19].mxu1  ;;  %v665_v55 = vsel %vm664_vm2, %v1485_v50, -inf }
 0x218   :  { %v1497_v57 = vsel %vm641_vm4, %v536_v54, -inf  ;;  %666 = vmax.xlane.f32.xlu0 %v665_v55  ;;  %v674_v60 = vsel %vm664_vm2, %v1491_v53, -inf }
 0x219   :  { %v668_v61 = vsel %vm664_vm2, %v1497_v57, -inf }
 0x21b   :  { %675 = vmax.xlane.f32.xlu1 %v674_v60 }
 0x21c   :  { %669 = vmax.xlane.f32.xlu0 %v668_v61  ;;  %v1171_v63 = vpop.f32.mrb[20].mxu1 }
 0x21d   :  { %v549_v0 = vpop.f32.mrb[21].mxu1  ;;  %v1515_v5 = vsel %vm646_vm6, %v1171_v63, -inf }
 0x21e   :  { %v1508_v1 = vsel %vm644_vm5, %v549_v0, -inf  ;;  %v1172_v2 = vpop.f32.mrb[22].mxu1  ;;  %v683_v9 = vsel %vm664_vm2, %v1515_v5, -inf }
 0x21f   :  { %v552_v3 = vpop.f32.mrb[23].mxu1  ;;  %v677_v4 = vsel %vm664_vm2, %v1508_v1, -inf  ;;  %v1525_v8 = vsel %vm647_vm8, %v1172_v2, -inf }
 0x220   :  { %v1519_v6 = vsel %vm645_vm7, %v552_v3, -inf  ;;  %678 = vmax.xlane.f32.xlu0 %v677_v4  ;;  %v686_v10 = vsel %vm664_vm2, %v1525_v8, -inf }
 0x221   :  { %v680_v7 = vsel %vm664_vm2, %v1519_v6, -inf }
 0x222   :  { %681 = vmax.xlane.f32.xlu1 %v680_v7 }
 0x224   :  { %684 = vmax.xlane.f32.xlu0 %v683_v9 }
 0x226   :  { %687 = vmax.xlane.f32.xlu1 %v686_v10 }
 0x234   :  { %v1183_v11 = vpop.f32.mrb[32].mxu0 }
 0x235   :  { %v598_v12 = vpop.f32.mrb[33].mxu0  ;;  %v1539_v19 = vsel %vm642_vm0, %v1183_v11, -inf }
 0x236   :  { %v1533_v13 = vsel %vm640_vm1, %v598_v12, -inf  ;;  %v1184_v15 = vpop.f32.mrb[34].mxu0  ;;  %v695_v23 = vsel %vm664_vm2, %v1539_v19, -inf }
 0x237   :  { %v601_v17 = vpop.f32.mrb[35].mxu0  ;;  %v689_v18 = vsel %vm664_vm2, %v1533_v13, -inf  ;;  %v1549_v22 = vsel %vm643_vm3, %v1184_v15, -inf }
 0x238   :  { %v1543_v20 = vsel %vm641_vm4, %v601_v17, -inf  ;;  %690 = vmax.xlane.f32.xlu0 %v689_v18  ;;  %v698_v27 = vsel %vm664_vm2, %v1549_v22, -inf }
 0x239   :  { %v692_v21 = vsel %vm664_vm2, %v1543_v20, -inf }
 0x23a   :  { %693 = vmax.xlane.f32.xlu1 %v692_v21 }
 0x23c   :  { %696 = vmax.xlane.f32.xlu0 %v695_v23  ;;  %v1187_v24 = vpop.f32.mrb[36].mxu0 }
 0x23d   :  { %v614_v25 = vpop.f32.mrb[37].mxu0  ;;  %v1563_v33 = vsel %vm646_vm6, %v1187_v24, -inf }
 0x23e   :  { %v1557_v29 = vsel %vm644_vm5, %v614_v25, -inf  ;;  %699 = vmax.xlane.f32.xlu1 %v698_v27  ;;  %v1188_v30 = vpop.f32.mrb[38].mxu0  ;;  %v707_v37 = vsel %vm664_vm2, %v1563_v33, -inf }
 0x23f   :  { %v617_v31 = vpop.f32.mrb[39].mxu0  ;;  %v701_v32 = vsel %vm664_vm2, %v1557_v29, -inf  ;;  %v1573_v36 = vsel %vm647_vm8, %v1188_v30, -inf }
 0x240   :  { %v1567_v34 = vsel %vm645_vm7, %v617_v31, -inf  ;;  %702 = vmax.xlane.f32.xlu0 %v701_v32  ;;  %v710_v38 = vsel %vm664_vm2, %v1573_v36, -inf }
 0x241   :  { %v704_v35 = vsel %vm664_vm2, %v1567_v34, -inf }
 0x242   :  { %705 = vmax.xlane.f32.xlu1 %v704_v35 }
 0x244   :  { %708 = vmax.xlane.f32.xlu0 %v707_v37 }
 0x246   :  { %711 = vmax.xlane.f32.xlu1 %v710_v38 }
 0x2a4   :  { %v673_v39 = vpop.xlane.xlu1 %672 }
 0x2a5   :  { %v715_v40 = vsub.f32 %v1480_v48, %v673_v39  ;;  %v667_v41 = vpop.xlane.xlu0 %666 }
 0x2a6   :  { %v713_v42 = vsub.f32 %v1485_v50, %v667_v41 }
 0x2a7   :  { %v733_v43 = vmul.f32 1.442695, %v715_v40 }
 0x2a8   :  { %v729_v45 = vmul.f32 1.442695, %v713_v42  ;;  %v676_v44 = vpop.xlane.xlu1 %675 }
 0x2a9   :  { %v716_v46 = vsub.f32 %v1491_v53, %v676_v44  ;;  %v670_v47 = vpop.xlane.xlu0 %669 }
 0x2aa   :  { %1271 = vpow2.f32 %v729_v45  ;;  %v714_v49 = vsub.f32 %v1497_v57, %v670_v47 }
 0x2ab   :  { %1273 = vpow2.f32 %v733_v43  ;;  %v735_v51 = vmul.f32 1.442695, %v716_v46 }
 0x2ac   :  { %v731_v52 = vmul.f32 1.442695, %v714_v49 }
 0x2ad   :  { %v679_v54 = vpop.xlane.xlu0 %678 }
 0x2ae   :  { %1275 = vpow2.f32 %v731_v52  ;;  %v717_v55 = vsub.f32 %v1508_v1, %v679_v54 }
 0x2af   :  { %v682_v48 = vpop.xlane.xlu1 %681  ;;  %1277 = vpow2.f32 %v735_v51 }
 0x2b0   :  { %v737_v56 = vmul.f32 1.442695, %v717_v55  ;;  %v718_v50 = vsub.f32 %v1519_v6, %v682_v48 }
 0x2b1   :  { %v685_v58 = vpop.xlane.xlu0 %684 }
 0x2b2   :  { %1279 = vpow2.f32 %v737_v56  ;;  %v739_v59 = vmul.f32 1.442695, %v718_v50  ;;  %v719_v53 = vsub.f32 %v1515_v5, %v685_v58 }
 0x2b3   :  { %v688_v60 = vpop.xlane.xlu1 %687 }
 0x2b4   :  { %v1586_v61 = vpop.eup %1271  ;;  %1281 = vpow2.f32 %v739_v59  ;;  %v741_v57 = vmul.f32 1.442695, %v719_v53  ;;  %v720_v62 = vsub.f32 %v1525_v8, %v688_v60 }
 0x2b5   :  { %v761_v63 = vsel %vm664_vm2, %v1586_v61, 0.0  ;;  %v1591_v0 = vpop.eup %1273 }
 0x2b6   :  { %1283 = vpow2.f32 %v741_v57  ;;  %v743_v1 = vmul.f32 1.442695, %v720_v62  ;;  %762 = vadd.xlane.f32.xlu0 %v761_v63  ;;  %v767_v3 = vsel %vm664_vm2, %v1591_v0, 0.0 }
 0x2b8   :  { %v1593_v2 = vpop.eup %1275  ;;  %1285 = vpow2.f32 %v743_v1 }
 0x2b9   :  { %v764_v4 = vsel %vm664_vm2, %v1593_v2, 0.0  ;;  %v1599_v5 = vpop.eup %1277 }
 0x2ba   :  { %768 = vadd.xlane.f32.xlu0 %v767_v3  ;;  %765 = vadd.xlane.f32.xlu1 %v764_v4  ;;  %v770_v8 = vsel %vm664_vm2, %v1599_v5, 0.0 }
 0x2bc   :  { %v1601_v6 = vpop.eup %1279 }
 0x2bd   :  { %v773_v7 = vsel %vm664_vm2, %v1601_v6, 0.0 }
 0x2be   :  { %v1607_v9 = vpop.eup %1281  ;;  %774 = vadd.xlane.f32.xlu0 %v773_v7  ;;  %771 = vadd.xlane.f32.xlu1 %v770_v8 }
 0x2bf   :  { %v776_v12 = vsel %vm664_vm2, %v1607_v9, 0.0 }
 0x2c0   :  { %v1609_v10 = vpop.eup %1283 }
 0x2c1   :  { %v779_v11 = vsel %vm664_vm2, %v1609_v10, 0.0 }
 0x2c2   :  { %v1615_v15 = vpop.eup %1285  ;;  %780 = vadd.xlane.f32.xlu0 %v779_v11  ;;  %777 = vadd.xlane.f32.xlu1 %v776_v12 }
 0x2c3   :  { %v782_v18 = vsel %vm664_vm2, %v1615_v15, 0.0 }
 0x2c5   :  { %v691_v17 = vpop.xlane.xlu0 %690 }
 0x2c6   :  { %v721_v21 = vsub.f32 %v1533_v13, %v691_v17  ;;  %783 = vadd.xlane.f32.xlu1 %v782_v18 }
 0x2c7   :  { %v694_v23 = vpop.xlane.xlu1 %693 }
 0x2c8   :  { %v745_v24 = vmul.f32 1.442695, %v721_v21  ;;  %v722_v25 = vsub.f32 %v1543_v20, %v694_v23 }
 0x2c9   :  { %v697_v27 = vpop.xlane.xlu0 %696 }
 0x2ca   :  { %1287 = vpow2.f32 %v745_v24  ;;  %v747_v30 = vmul.f32 1.442695, %v722_v25  ;;  %v723_v31 = vsub.f32 %v1539_v19, %v697_v27 }
 0x2cb   :  { %v700_v32 = vpop.xlane.xlu1 %699 }
 0x2cc   :  { %1289 = vpow2.f32 %v747_v30  ;;  %v749_v35 = vmul.f32 1.442695, %v723_v31  ;;  %v724_v37 = vsub.f32 %v1549_v22, %v700_v32 }
 0x2cd   :  { %v703_v38 = vpop.xlane.xlu0 %702 }
 0x2ce   :  { %1291 = vpow2.f32 %v749_v35  ;;  %v751_v39 = vmul.f32 1.442695, %v724_v37  ;;  %v725_v13 = vsub.f32 %v1557_v29, %v703_v38 }
 0x2cf   :  { %v706_v40 = vpop.xlane.xlu1 %705 }
 0x2d0   :  { %1293 = vpow2.f32 %v751_v39  ;;  %v753_v41 = vmul.f32 1.442695, %v725_v13  ;;  %v726_v20 = vsub.f32 %v1567_v34, %v706_v40 }
 0x2d1   :  { %v709_v42 = vpop.xlane.xlu0 %708 }
 0x2d2   :  { %1295 = vpow2.f32 %v753_v41  ;;  %v755_v43 = vmul.f32 1.442695, %v726_v20  ;;  %v727_v19 = vsub.f32 %v1563_v33, %v709_v42 }
 0x2d3   :  { %v712_v45 = vpop.xlane.xlu1 %711 }
 0x2d4   :  { %v1626_v44 = vpop.eup %1287  ;;  %1297 = vpow2.f32 %v755_v43  ;;  %v757_v22 = vmul.f32 1.442695, %v727_v19  ;;  %v728_v46 = vsub.f32 %v1573_v36, %v712_v45 }
 0x2d5   :  { %v785_v29 = vsel %vm664_vm2, %v1626_v44, 0.0 }
 0x2d6   :  { %v1631_v47 = vpop.eup %1289  ;;  %1299 = vpow2.f32 %v757_v22  ;;  %v759_v49 = vmul.f32 1.442695, %v728_v46  ;;  %786 = vadd.xlane.f32.xlu0 %v785_v29 }
 0x2d7   :  { %v788_v34 = vsel %vm664_vm2, %v1631_v47, 0.0 }
 0x2d8   :  { %v1635_v51 = vpop.eup %1291  ;;  %1301 = vpow2.f32 %v759_v49  ;;  %789 = vadd.xlane.f32.xlu1 %v788_v34 }
 0x2d9   :  { %v791_v33 = vsel %vm664_vm2, %v1635_v51, 0.0 }
 0x2da   :  { %v1639_v52 = vpop.eup %1293  ;;  %792 = vadd.xlane.f32.xlu0 %v791_v33 }
 0x2db   :  { %v794_v36 = vsel %vm664_vm2, %v1639_v52, 0.0 }
 0x2dc   :  { %v1643_v54 = vpop.eup %1295  ;;  %795 = vadd.xlane.f32.xlu1 %v794_v36 }
 0x2dd   :  { %v797_v55 = vsel %vm664_vm2, %v1643_v54, 0.0 }
 0x2de   :  { %v1647_v48 = vpop.eup %1297  ;;  %798 = vadd.xlane.f32.xlu0 %v797_v55 }
 0x2df   :  { %v800_v56 = vsel %vm664_vm2, %v1647_v48, 0.0 }
 0x2e0   :  { %v1651_v50 = vpop.eup %1299  ;;  %801 = vadd.xlane.f32.xlu1 %v800_v56 }
 0x2e1   :  { %v803_v58 = vsel %vm664_vm2, %v1651_v50, 0.0 }
 0x2e2   :  { %v1655_v59 = vpop.eup %1301  ;;  %804 = vadd.xlane.f32.xlu0 %v803_v58 }
 0x2e3   :  { %v806_v53 = vsel %vm664_vm2, %v1655_v59, 0.0 }
 0x2e4   :  { %807 = vadd.xlane.f32.xlu1 %v806_v53 }
 0x343   :  { %v763_v60 = vpop.xlane.xlu0 %762 }
 0x344   :  { %1303 = vrcp.f32 %v763_v60 }
 0x347   :  { %v769_v57 = vpop.xlane.xlu0 %768  ;;  %v766_v62 = vpop.xlane.xlu1 %765 }
 0x348   :  { %1305 = vrcp.f32 %v766_v62 }
 0x349   :  { %1307 = vrcp.f32 %v769_v57 }
 0x34b   :  { %v775_v63 = vpop.xlane.xlu0 %774  ;;  %v772_v1 = vpop.xlane.xlu1 %771 }
 0x34c   :  { %1309 = vrcp.f32 %v772_v1 }
 0x34d   :  { %1311 = vrcp.f32 %v775_v63 }
 0x34e   :  { %v1304_v7 = vpop.eup %1303 }
 0x34f   :  { %v781_v3 = vpop.xlane.xlu0 %780  ;;  %v778_v4 = vpop.xlane.xlu1 %777  ;;  %v825_v12 = vmul.f32 %v1304_v7, %v1586_v61 }
 0x350   :  { %1313 = vrcp.f32 %v778_v4 }
 0x351   :  { %1315 = vrcp.f32 %v781_v3 }
 0x352   :  { %v1306_v8 = vpop.eup %1305 }
 0x353   :  { %v784_v11 = vpop.xlane.xlu1 %783  ;;  %v826_v17 = vmul.f32 %v1306_v8, %v1593_v2  ;;  %v1308_v18 = vpop.eup %1307 }
 0x354   :  { %1317 = vrcp.f32 %v784_v11  ;;  %v827_v24 = vmul.f32 %v1308_v18, %v1591_v0 }
 0x355   :  { %v841_v21 = vpack.c.bf16 %v826_v17, %v825_v12 }
 0x356   :  { %v1310_v23 = vpop.eup %1309 }
 0x357   :  { %v828_v25 = vmul.f32 %v1310_v23, %v1599_v5  ;;  %1197 = vmatprep.mubr.msk.bf16.mxu1 %vm664_vm2, %v841_v21  ;;  %v1312_v27 = vpop.eup %1311 }
 0x358   :  { %v829_v35 = vmul.f32 %v1312_v27, %v1601_v6 }
 0x359   :  { %v842_v30 = vpack.c.bf16 %v828_v25, %v827_v24 }
 0x35a   :  { %v1314_v31 = vpop.eup %1313 }
 0x35b   :  { %v1316_v32 = vpop.eup %1315  ;;  %1198 = vmatmul.mubr.msk.bf16.vlgmr.msra.gmra.mrb[24].mxu1 %vm664_vm2, %v842_v30  ;;  %v830_v61 = vmul.f32 %v1314_v31, %v1607_v9 }
 0x35c   :  { %1206 = vmatpush3.bf16.msra.mxu1 %v1466_v16  ;;  %v831_v5 = vmul.f32 %v1316_v32, %v1609_v10 }
 0x35d   :  { %1207 = vmatprep.subr.bf16.mxu1 %v1464_v14  ;;  %v843_v0 = vpack.c.bf16 %v830_v61, %v829_v35 }
 0x35e   :  { %v1318_v2 = vpop.eup %1317 }
 0x35f   :  { %v832_v37 = vmul.f32 %v1318_v2, %v1615_v15  ;;  %1201 = vmatprep.mubr.msk.bf16.mxu1 %vm664_vm2, %v843_v0 }
 0x360   :  { %1208 = vmatpush3.bf16.msra.mxu1 %v1464_v14 }
 0x361   :  { %v844_v38 = vpack.c.bf16 %v832_v37, %v831_v5  ;;  %1209 = vmatprep.subr.bf16.mxu1 %v1470_v28 }
 0x363   :  { %v787_v6 = vpop.xlane.xlu0 %786  ;;  %1202 = vmatmul.mubr.msk.bf16.gmra.mrb[28].mxu1 %vm664_vm2, %v844_v38 }
 0x364   :  { %1319 = vrcp.f32 %v787_v6  ;;  %1210 = vmatpush3.bf16.msra.mxu1 %v1470_v28 }
 0x365   :  { %v790_v16 = vpop.xlane.xlu1 %789  ;;  %1211 = vmatprep.subr.bf16.mxu1 %v1468_v26 }
 0x366   :  { %1321 = vrcp.f32 %v790_v16 }
 0x367   :  { %v793_v9 = vpop.xlane.xlu0 %792 }
 0x368   :  { %1323 = vrcp.f32 %v793_v9  ;;  %1212 = vmatpush3.bf16.msra.mxu1 %v1468_v26 }
 0x369   :  { %v796_v10 = vpop.xlane.xlu1 %795 }
 0x36a   :  { %1325 = vrcp.f32 %v796_v10 }
 0x36b   :  { %v799_v14 = vpop.xlane.xlu0 %798 }
 0x36c   :  { %1327 = vrcp.f32 %v799_v14 }
 0x36d   :  { %v802_v15 = vpop.xlane.xlu1 %801 }
 0x36e   :  { %v1320_v39 = vpop.eup %1319  ;;  %1329 = vrcp.f32 %v802_v15 }
 0x36f   :  { %v805_v13 = vpop.xlane.xlu0 %804  ;;  %v833_v28 = vmul.f32 %v1320_v39, %v1626_v44 }
 0x370   :  { %v1322_v40 = vpop.eup %1321  ;;  %1331 = vrcp.f32 %v805_v13 }
 0x371   :  { %v808_v41 = vpop.xlane.xlu1 %807  ;;  %v834_v20 = vmul.f32 %v1322_v40, %v1631_v47 }
 0x372   :  { %v1324_v42 = vpop.eup %1323  ;;  %1333 = vrcp.f32 %v808_v41 }
 0x373   :  { %v845_v43 = vpack.c.bf16 %v834_v20, %v833_v28  ;;  %v835_v26 = vmul.f32 %v1324_v42, %v1635_v51 }
 0x374   :  { %v1326_v19 = vpop.eup %1325 }
 0x375   :  { %v836_v45 = vmul.f32 %v1326_v19, %v1639_v52  ;;  %1213 = vmatprep.mubr.msk.bf16.mxu1 %vm664_vm2, %v845_v43 }
 0x376   :  { %v1328_v22 = vpop.eup %1327 }
 0x377   :  { %v846_v46 = vpack.c.bf16 %v836_v45, %v835_v26  ;;  %v837_v49 = vmul.f32 %v1328_v22, %v1643_v54 }
 0x378   :  { %v1330_v29 = vpop.eup %1329 }
 0x379   :  { %1214 = vmatmul.mubr.msk.bf16.vlgmr.msra.gmra.mrb[32].mxu1 %vm664_vm2, %v846_v46  ;;  %v838_v44 = vmul.f32 %v1330_v29, %v1647_v48 }
 0x37a   :  { %v1332_v47 = vpop.eup %1331 }
 0x37b   :  { %v847_v34 = vpack.c.bf16 %v838_v44, %v837_v49  ;;  %v839_v51 = vmul.f32 %v1332_v47, %v1651_v50 }
 0x37c   :  { %v1334_v33 = vpop.eup %1333 }
 0x37d   :  { %1217 = vmatprep.mubr.msk.bf16.mxu1 %vm664_vm2, %v847_v34  ;;  %v840_v52 = vmul.f32 %v1334_v33, %v1655_v59 }
 0x37f   :  { %v848_v36 = vpack.c.bf16 %v840_v52, %v839_v51 }
 0x381   :  { %1218 = vmatmul.mubr.msk.bf16.gmra.mrb[36].mxu1 %vm664_vm2, %v848_v36 }
 0x42e   :  { %v1199_v55 = vpop.f32.mrb[24].mxu1 }
 0x42f   :  { %1005 = vst [vmem:[#allocation7 + $0x10] sm:$0xff] %v1199_v55  ;;  %v895_v56 = vpop.f32.mrb[25].mxu1 }
 0x430   :  { %1003 = vst [vmem:[#allocation7] sm:$0xff] %v895_v56  ;;  %v1200_v58 = vpop.f32.mrb[26].mxu1 }
 0x431   :  { %1006 = vst [vmem:[#allocation7 + $0x18] sm:$0xff] %v1200_v58  ;;  %v898_v54 = vpop.f32.mrb[27].mxu1 }
 0x432   :  { %1004 = vst [vmem:[#allocation7 + $0x8] sm:$0xff] %v898_v54 }
 0x436   :  { %v1203_v48 = vpop.f32.mrb[28].mxu1 }
 0x437   :  { %1009 = vst [vmem:[#allocation7 + $0x30] sm:$0xff] %v1203_v48  ;;  %v911_v53 = vpop.f32.mrb[29].mxu1 }
 0x438   :  { %1007 = vst [vmem:[#allocation7 + $0x20] sm:$0xff] %v911_v53  ;;  %v1204_v60 = vpop.f32.mrb[30].mxu1 }
 0x439   :  { %1010 = vst [vmem:[#allocation7 + $0x38] sm:$0xff] %v1204_v60  ;;  %v914_v50 = vpop.f32.mrb[31].mxu1 }
 0x43a   :  { %1008 = vst [vmem:[#allocation7 + $0x28] sm:$0xff] %v914_v50 }
 0x44c   :  { %v1215_v59 = vpop.f32.mrb[32].mxu1 }
 0x44d   :  { %1013 = vst [vmem:[#allocation7 + $0x50] sm:$0xff] %v1215_v59  ;;  %v972_v57 = vpop.f32.mrb[33].mxu1 }
 0x44e   :  { %1011 = vst [vmem:[#allocation7 + $0x40] sm:$0xff] %v972_v57  ;;  %v1216_v62 = vpop.f32.mrb[34].mxu1 }
 0x44f   :  { %1014 = vst [vmem:[#allocation7 + $0x58] sm:$0xff] %v1216_v62  ;;  %v975_v63 = vpop.f32.mrb[35].mxu1 }
 0x450   :  { %1012 = vst [vmem:[#allocation7 + $0x48] sm:$0xff] %v975_v63 }
 0x454   :  { %v1219_v1 = vpop.f32.mrb[36].mxu1 }
 0x455   :  { %1017 = vst [vmem:[#allocation7 + $0x70] sm:$0xff] %v1219_v1  ;;  %v988_v3 = vpop.f32.mrb[37].mxu1 }
 0x456   :  { %1015 = vst [vmem:[#allocation7 + $0x60] sm:$0xff] %v988_v3  ;;  %v1220_v4 = vpop.f32.mrb[38].mxu1 }
 0x457   :  { %1018 = vst [vmem:[#allocation7 + $0x78] sm:$0xff] %v1220_v4  ;;  %v991_v7 = vpop.f32.mrb[39].mxu1 }
 0x458   :  { %1016 = vst [vmem:[#allocation7 + $0x68] sm:$0xff] %v991_v7 }
 0x459   :  { %1390 = shalt.err (!%p1387_p6)
}
 0x45a   :  { %s1391_s12 = scalar_lea.hbm %s1704_s2, 2048 }
 0x45b   :  { %p1392_p7 = scmp.ne.s32.totalorder %s1704_s2, %s1391_s12  ;;  %p1395_p8 = scmp.lt.u32.totalorder %s1391_s12, %s1704_s2 }
 0x45d   :  { %p1397_p9 = pnand %p1395_p8, %p1392_p7 }
 0x45f   :  { %1400 = shalt.err (!%p1397_p9)
}
 0x460   :  { %s1415_s17 = smov 128   ;;  %s1416_s18 = smov 8  }
 0x461   :  { %1030 = dma.vmem_to_hbm [thread:$0]  %s1025_s8, 2048, %s1704_s2, [#allocation4], %s1415_s17, %s1415_s17, %s1416_s18  }
 0x462   :  { %1405 = dma.done.wait [#allocation4], 2048  }
 0x463   :  { %1406 = vsyncadd [#allocation4], 4294965248 }
 0x464   :  { %1034 = vsyncpa [#allocation3], 1 }
 0x465   :  { %1035 = vsyncpa [#allocation6], 1 }
 0x466   :  { %1036 = vsyncpa [#allocation4], 1 }

</bundles_post_ra>
